<compile_context>
chip_gen: v7x
topology: tpu7x:2x2x1
jax: 0.10.0
libtpu: 0.0.40
codegen_flags: <defaults>
</compile_context>

<pallas_src>
import jax
import jax.numpy as jnp
from jax.experimental import pallas as pl
from jax.experimental.pallas import tpu as pltpu


def _round_up(x, m):
    return ((x + m - 1) // m) * m


def _head_kernel(x_ref, w1_ref, b1_ref, w2_ref, b2_ref, o_ref):
    # x_ref : (TB, H)   current batch tile (f32 or bf16)
    # w1_ref: (H, H)    dense weight, [in, out] layout (resident across grid steps)
    # b1_ref: (1, H)    dense bias (f32)
    # w2_ref: (H, Lp)   out_proj weight, [in, out] layout, label dim padded to 128
    # b2_ref: (1, Lp)   out_proj bias (f32)
    # o_ref : (TB, Lp)  logits tile
    # dropout (eval mode) -> identity
    h = jnp.dot(x_ref[...], w1_ref[...], preferred_element_type=jnp.float32)
    h = jnp.tanh(h + b1_ref[...])                       # bias add + tanh on f32 accumulator
    # dropout (eval mode) -> identity
    y = jnp.dot(h.astype(w2_ref.dtype), w2_ref[...],
                preferred_element_type=jnp.float32)
    o_ref[...] = (y + b2_ref[...]).astype(o_ref.dtype)


def roberta_classification_head(features, w1, b1, w2, b2, *,
                                batch_tile=None, compute_dtype=None,
                                training=False):
    """Fused classification-head forward.

    features: [B, H]; w1: [H, H] ([in, out]); b1: [H]; w2: [H, L] ([in, out]); b2: [L].
    compute_dtype: optionally cast x / W1 / W2 (e.g. jnp.bfloat16). Accumulation,
                   biases and tanh stay float32.
    """
    if training:
        # TODO(synk): training-mode stochastic dropout not implemented.
        raise NotImplementedError("only eval-mode (dropout = identity) is supported")

    B, H = features.shape
    L = w2.shape[1]
    out_dtype = features.dtype

    # Optional low-precision compute path.
    if compute_dtype is not None:
        features = features.astype(compute_dtype)
        w1 = w1.astype(compute_dtype)
        w2 = w2.astype(compute_dtype)
    b1_2d = b1.astype(jnp.float32).reshape(1, H)

    # Lane-dense output: pad the label dim up to a multiple of 128.
    L_pad = _round_up(L, 128)
    if L_pad != L:
        w2 = jnp.pad(w2, ((0, 0), (0, L_pad - L)))
        b2 = jnp.pad(b2, ((0, L_pad - L),))
    b2_2d = b2.astype(jnp.float32).reshape(1, L_pad)

    # Large batch tile (few grid steps); pad batch so any B works.
    sublane = 8 if features.dtype.itemsize >= 4 else 16
    if batch_tile is None:
        batch_tile = min(256, _round_up(B, sublane))
    batch_tile = _round_up(batch_tile, sublane)
    B_pad = _round_up(B, batch_tile)
    if B_pad != B:
        features = jnp.pad(features, ((0, B_pad - B), (0, 0)))

    grid = (B_pad // batch_tile,)

    # Explicit VMEM sizing (important on v7x's 64 MiB physical VMEM): x/out are
    # double-buffered across grid steps; weights counted double-buffered as a
    # worst case even though their block index is constant.
    x_bytes = 2 * batch_tile * H * features.dtype.itemsize
    o_bytes = 2 * batch_tile * L_pad * jnp.dtype(out_dtype).itemsize
    w_bytes = 2 * (H * H + H * L_pad) * w1.dtype.itemsize
    b_bytes = 2 * (H + L_pad) * 4
    vmem_limit = int(min(max(x_bytes + o_bytes + w_bytes + b_bytes + (2 << 20),
                             8 << 20), 64 << 20))

    out = pl.pallas_call(
        _head_kernel,
        out_shape=jax.ShapeDtypeStruct((B_pad, L_pad), out_dtype),
        grid_spec=pltpu.PrefetchScalarGridSpec(
            num_scalar_prefetch=0,
            grid=grid,
            in_specs=[
                pl.BlockSpec((batch_tile, H), lambda i: (i, 0)),   # x tile
                pl.BlockSpec((H, H), lambda i: (0, 0)),            # dense weight (resident)
                pl.BlockSpec((1, H), lambda i: (0, 0)),            # dense bias
                pl.BlockSpec((H, L_pad), lambda i: (0, 0)),        # out_proj weight (resident)
                pl.BlockSpec((1, L_pad), lambda i: (0, 0)),        # out_proj bias
            ],
            out_specs=pl.BlockSpec((batch_tile, L_pad), lambda i: (i, 0)),
        ),
        compiler_params=pltpu.CompilerParams(
            dimension_semantics=("parallel",),   # shards batch across v7x's 2 TCs when grid > 1
            vmem_limit_bytes=vmem_limit,
        ),
    )(features, w1, b1_2d, w2, b2_2d)

    return out[:B, :L]


if __name__ == "__main__":
    hidden, num_labels = 256, 3          # scaled-down stand-in for bert_hidden_dim=1024

    key = jax.random.PRNGKey(0)
    k_x, k_w1, k_b1, k_w2, k_b2 = jax.random.split(key, 5)

    # PyTorch nn.Linear stores weight as [out, in]; we generate [in, out] directly
    # (equivalent to a deterministic init followed by a transpose).
    w_dense = jax.random.normal(k_w1, (hidden, hidden), dtype=jnp.float32) * 0.02
    b_dense = jax.random.normal(k_b1, (hidden,), dtype=jnp.float32) * 0.02
    w_out = jax.random.normal(k_w2, (hidden, num_labels), dtype=jnp.float32) * 0.02
    b_out = jax.random.normal(k_b2, (num_labels,), dtype=jnp.float32) * 0.02

    def ref(x):
        return jnp.tanh(x @ w_dense + b_dense) @ w_out + b_out

    # 1) small, non-multiple-of-8 batch -> single grid step + batch padding path.
    feats = jax.random.normal(k_x, (10, hidden), dtype=jnp.float32)
    logits = jax.block_until_ready(
        roberta_classification_head(feats, w_dense, b_dense, w_out, b_out))
    assert logits.shape == (10, num_labels)
    assert jnp.allclose(logits, ref(feats), atol=1e-4, rtol=1e-4)

    # 2) multi-step batch grid (exercises the pipelined / parallel batch axis).
    feats2 = jax.random.normal(k_x, (40, hidden), dtype=jnp.float32)
    logits2 = jax.block_until_ready(
        roberta_classification_head(feats2, w_dense, b_dense, w_out, b_out,
                                    batch_tile=16))
    assert logits2.shape == (40, num_labels)
    assert jnp.allclose(logits2, ref(feats2), atol=1e-4, rtol=1e-4)

    # 3) bf16 compute path (f32 accumulation), looser tolerance.
    logits_bf16 = jax.block_until_ready(
        roberta_classification_head(feats, w_dense, b_dense, w_out, b_out,
                                    compute_dtype=jnp.bfloat16))
    assert jnp.allclose(logits_bf16, ref(feats), atol=3e-2, rtol=3e-2)

    print("KERNEL_OK")
</pallas_src>

<mosaic_0001>
module attributes {stable_mosaic.version = 11 : i64} {
  func.func @_head_kernel(%arg0: i32, %arg1: memref<16x256xf32, #tpu.memory_space<vmem>>, %arg2: memref<256x256xf32, #tpu.memory_space<vmem>>, %arg3: memref<1x256xf32, #tpu.memory_space<vmem>>, %arg4: memref<256x128xf32, #tpu.memory_space<vmem>>, %arg5: memref<1x128xf32, #tpu.memory_space<vmem>>, %arg6: memref<16x128xf32, #tpu.memory_space<vmem>>) attributes {dimension_semantics = [#tpu.dimension_semantics<parallel>], iteration_bounds = array<i64: 1>, scalar_prefetch = 0 : i64, scratch_operands = 0 : i64, tpu.core_type = #tpu.core_type<tc>, window_params = [{transform_indices = @transform_0, window_bounds = array<i64: 16, 256>}, {pipeline_mode = #tpu.pipeline_mode<synchronous>, transform_indices = @transform_1, window_bounds = array<i64: 256, 256>}, {pipeline_mode = #tpu.pipeline_mode<synchronous>, transform_indices = @transform_2, window_bounds = array<i64: 1, 256>}, {pipeline_mode = #tpu.pipeline_mode<synchronous>, transform_indices = @transform_3, window_bounds = array<i64: 256, 128>}, {pipeline_mode = #tpu.pipeline_mode<synchronous>, transform_indices = @transform_4, window_bounds = array<i64: 1, 128>}, {transform_indices = @transform_5, window_bounds = array<i64: 16, 128>}]} {
    %c0 = arith.constant 0 : index
    %c0_0 = arith.constant 0 : index
    %0 = vector.load %arg1[%c0, %c0_0] : memref<16x256xf32, #tpu.memory_space<vmem>>, vector<16x256xf32>
    %c0_1 = arith.constant 0 : index
    %c0_2 = arith.constant 0 : index
    %1 = vector.load %arg2[%c0_1, %c0_2] : memref<256x256xf32, #tpu.memory_space<vmem>>, vector<256x256xf32>
    %cst = arith.constant dense<0.000000e+00> : vector<16x256xf32>
    %2 = tpu.matmul %0, %1, %cst {dimension_numbers = #tpu.dot_dimension_numbers<[1], [0], [0], [1], [0, 0, 1, 1], [], []>} : vector<16x256xf32>, vector<256x256xf32>, vector<16x256xf32> -> vector<16x256xf32>
    %c0_3 = arith.constant 0 : index
    %c0_4 = arith.constant 0 : index
    %3 = vector.load %arg3[%c0_3, %c0_4] : memref<1x256xf32, #tpu.memory_space<vmem>>, vector<1x256xf32>
    %4 = vector.broadcast %3 : vector<1x256xf32> to vector<16x256xf32>
    %5 = arith.addf %2, %4 : vector<16x256xf32>
    %6 = math.tanh %5 : vector<16x256xf32>
    %c0_5 = arith.constant 0 : index
    %c0_6 = arith.constant 0 : index
    %7 = vector.load %arg4[%c0_5, %c0_6] : memref<256x128xf32, #tpu.memory_space<vmem>>, vector<256x128xf32>
    %cst_7 = arith.constant dense<0.000000e+00> : vector<16x128xf32>
    %8 = tpu.matmul %6, %7, %cst_7 {dimension_numbers = #tpu.dot_dimension_numbers<[1], [0], [0], [1], [0, 0, 1, 1], [], []>} : vector<16x256xf32>, vector<256x128xf32>, vector<16x128xf32> -> vector<16x128xf32>
    %c0_8 = arith.constant 0 : index
    %c0_9 = arith.constant 0 : index
    %9 = vector.load %arg5[%c0_8, %c0_9] : memref<1x128xf32, #tpu.memory_space<vmem>>, vector<1x128xf32>
    %10 = vector.broadcast %9 : vector<1x128xf32> to vector<16x128xf32>
    %11 = arith.addf %8, %10 : vector<16x128xf32>
    %c0_10 = arith.constant 0 : index
    %c0_11 = arith.constant 0 : index
    %12 = vector.load %arg6[%c0_10, %c0_11] : memref<16x128xf32, #tpu.memory_space<vmem>>, vector<16x128xf32>
    tpu.vector_store %arg6[%c0_10, %c0_11], %11 {strides = array<i32>} : memref<16x128xf32, #tpu.memory_space<vmem>>, vector<16x128xf32>,
    return
  }
  func.func @transform_0(%arg0: i32) -> (i32, i32) {
    %c0_i32 = arith.constant 0 : i32
    %c0_i32_0 = arith.constant 0 : i32
    return %arg0, %c0_i32 : i32, i32
  }
  func.func @transform_1(%arg0: i32) -> (i32, i32) {
    %c0_i32 = arith.constant 0 : i32
    %c0_i32_0 = arith.constant 0 : i32
    %c0_i32_1 = arith.constant 0 : i32
    return %c0_i32, %c0_i32_0 : i32, i32
  }
  func.func @transform_2(%arg0: i32) -> (i32, i32) {
    %c0_i32 = arith.constant 0 : i32
    %c0_i32_0 = arith.constant 0 : i32
    %c0_i32_1 = arith.constant 0 : i32
    return %c0_i32, %c0_i32_0 : i32, i32
  }
  func.func @transform_3(%arg0: i32) -> (i32, i32) {
    %c0_i32 = arith.constant 0 : i32
    %c0_i32_0 = arith.constant 0 : i32
    %c0_i32_1 = arith.constant 0 : i32
    return %c0_i32, %c0_i32_0 : i32, i32
  }
  func.func @transform_4(%arg0: i32) -> (i32, i32) {
    %c0_i32 = arith.constant 0 : i32
    %c0_i32_0 = arith.constant 0 : i32
    %c0_i32_1 = arith.constant 0 : i32
    return %c0_i32, %c0_i32_0 : i32, i32
  }
  func.func @transform_5(%arg0: i32) -> (i32, i32) {
    %c0_i32 = arith.constant 0 : i32
    %c0_i32_0 = arith.constant 0 : i32
    return %arg0, %c0_i32 : i32, i32
  }
}

</mosaic_0001>

<bundles_post_ra>
// kernel: tpu_custom_call.1
= control target key start
LH: loop header
LB: loop body
LE: loop exit
PB: predicated region body
PF: predicated region fallthrough
CT: control target
= control target key end

     0   :  { %10 = vsyncpa [#allocation3], 0  ;;  %s707_s0 = inlined_call_operand.hbm [shape: f32[16,256], index: 0, kind: input, shape index: {}]   ;;  %s708_s1 = inlined_call_operand.hbm [shape: f32[256,256], index: 1, kind: input, shape index: {}]   ;;  %s709_s2 = inlined_call_operand.vmem [shape: f32[1,256], index: 2, kind: input, shape index: {}]   ;;  %s710_s3 = inlined_call_operand.hbm [shape: f32[256,128], index: 3, kind: input, shape index: {}]   ;;  %s711_s4 = inlined_call_operand.vmem [shape: f32[1,128], index: 4, kind: input, shape index: {}]   ;;  %s712_s5 = inlined_call_operand.hbm [shape: f32[16,128], index: 5, kind: output, shape index: {}]  }
   0x1   :  { %11 = vsyncpa [#allocation6], 0 }
   0x2   :  { %12 = vsyncpa [#allocation4], 0  ;;  %s602_s18 = smov [#allocation5]   ;;  %s603_s20 = smov [#allocation2]  }
   0x3   :  { %s30_s19 = sshll.u32 %s602_s18, 4  ;;  %s18_s21 = sshll.u32 %s603_s20, 4  ;;  %s31_s19 = int_to_ptr.vmem [resolvable:$true] %s30_s19  ;;  %s640_s21 = int_to_ptr.vmem [resolvable:$true] %s18_s21 }
   0x4   :  { %s508_s24 = scalar_lea.hbm %s708_s1, 8192 }
   0x5   :  { %p509_p0 = scmp.ne.s32.totalorder %s708_s1, %s508_s24  ;;  %p512_p1 = scmp.lt.u32.totalorder %s508_s24, %s708_s1 }
   0x7   :  { %p514_p2 = pnand %p512_p1, %p509_p0 }
   0x9   :  { %517 = shalt.err (!%p514_p2)
}
   0xa   :  { %s518_s29 = scalar_lea.vmem %s31_s19, 8192  ;;  %p523_p4 = scmp.lt.s32.totalorder %s31_s19, %s31_s19 }
   0xb   :  { %p519_p3 = scmp.ne.s32.totalorder %s31_s19, %s518_s29  ;;  %p524_p5 = scmp.lt.s32.totalorder %s518_s29, %s518_s29 }
   0xd   :  { %p525_p6 = por %p524_p5, %p523_p4 }
   0xf   :  { %p526_p7 = pnand %p525_p6, %p519_p3 }
  0x11   :  { %529 = shalt.err (!%p526_p7)
}
  0x12   :  { %s604_s30 = smov 256   ;;  %s605_s6 = smov 16  }
  0x13   :  { %36 = dma.hbm_to_vmem [thread:$0]  %s708_s1, 8192, %s31_s19, [#allocation6], %s604_s30, %s604_s30, %s605_s6  }
  0x14   :  { %s530_s11 = scalar_lea.hbm %s707_s0, 512 }
  0x15   :  { %p531_p8 = scmp.ne.s32.totalorder %s707_s0, %s530_s11  ;;  %p534_p9 = scmp.lt.u32.totalorder %s530_s11, %s707_s0 }
  0x17   :  { %p536_p10 = pnand %p534_p9, %p531_p8 }
  0x19   :  { %539 = shalt.err (!%p536_p10)
}
  0x1a   :  { %s540_s16 = scalar_lea.vmem %s640_s21, 512  ;;  %p545_p12 = scmp.lt.s32.totalorder %s640_s21, %s640_s21 }
  0x1b   :  { %p541_p11 = scmp.ne.s32.totalorder %s640_s21, %s540_s16  ;;  %p546_p13 = scmp.lt.s32.totalorder %s540_s16, %s540_s16 }
  0x1d   :  { %p547_p0 = por %p546_p13, %p545_p12 }
  0x1f   :  { %p548_p1 = pnand %p547_p0, %p541_p11 }
  0x21   :  { %551 = shalt.err (!%p548_p1)
}
  0x22   :  { %24 = dma.hbm_to_vmem [thread:$0]  %s707_s0, 512, %s640_s21, [#allocation3], %s604_s30, %s604_s30, %s605_s6  }
  0x23   :  { %s606_s18 = smov [#allocation7]   ;;  %s552_s23 = scalar_lea.hbm %s710_s3, 4096 }
  0x24   :  { %s44_s19 = sshll.u32 %s606_s18, 4  ;;  %p553_p2 = scmp.ne.s32.totalorder %s710_s3, %s552_s23  ;;  %s45_s19 = int_to_ptr.vmem [resolvable:$true] %s44_s19 }
  0x25   :  { %p556_p3 = scmp.lt.u32.totalorder %s552_s23, %s710_s3 }
  0x27   :  { %p558_p4 = pnand %p556_p3, %p553_p2 }
  0x29   :  { %561 = shalt.err (!%p558_p4)
}
  0x2a   :  { %s562_s28 = scalar_lea.vmem %s45_s19, 4096  ;;  %p567_p6 = scmp.lt.s32.totalorder %s45_s19, %s45_s19 }
  0x2b   :  { %p563_p5 = scmp.ne.s32.totalorder %s45_s19, %s562_s28  ;;  %p568_p7 = scmp.lt.s32.totalorder %s562_s28, %s562_s28 }
  0x2d   :  { %p569_p8 = por %p568_p7, %p567_p6 }
  0x2f   :  { %p570_p9 = pnand %p569_p8, %p563_p5 }
  0x31   :  { %573 = shalt.err (!%p570_p9)
}
  0x32   :  { %s607_s0 = smov 128   ;;  %s608_s21 = smov 8  }
  0x33   :  { %50 = dma.hbm_to_vmem [thread:$0]  %s710_s3, 4096, %s45_s19, [#allocation6], %s607_s0, %s607_s0, %s608_s21  }
  0x34   :  { %596 = dma.done.wait [#allocation3], 512  }
  0x35   :  { %597 = vsyncadd [#allocation3], 4294966784 }
  0x36   :  { %598 = dma.done.wait [#allocation6], 12288  }
  0x37   :  { %599 = vsyncadd [#allocation6], 4294955008  ;;  %v67_v0 = vld [vmem:[#allocation5 + $0x8] sm:$0xff]  ;;  %v69_v1 = vld [vmem:[#allocation5 + $0x18] sm:$0xff]  ;;  %s609_s8 = smov [#allocation8]  }
  0x38   :  { %v66_v2 = vld [vmem:[#allocation5] sm:$0xff]  ;;  %v396_v3 = vpack.c.bf16 %v69_v1, %v67_v0  ;;  %v68_v4 = vld [vmem:[#allocation5 + $0x10] sm:$0xff]  ;;  %v71_v5 = vld [vmem:[#allocation5 + $0x28] sm:$0xff]  ;;  %s344_s9 = sshll.u32 %s609_s8, 4  ;;  %s345_s9 = int_to_ptr.vmem [resolvable:$true] %s344_s9 }
  0x39   :  { %v73_v6 = vld [vmem:[#allocation5 + $0x38] sm:$0xff]  ;;  %v398_v7 = vpack.c.bf16 %v68_v4, %v66_v2  ;;  %v70_v9 = vld [vmem:[#allocation5 + $0x20] sm:$0xff]  ;;  %v72_v10 = vld [vmem:[#allocation5 + $0x30] sm:$0xff]  ;;  %s574_s10 = scalar_lea.vmem %s345_s9, 256  ;;  %p579_p11 = scmp.lt.s32.totalorder %s345_s9, %s345_s9 }
  0x3a   :  { %v400_v8 = vpack.c.bf16 %v73_v6, %v71_v5  ;;  %v75_v11 = vld [vmem:[#allocation5 + $0x48] sm:$0xff]  ;;  %397 = vmatprep.subr.bf16.mxu0 %v396_v3  ;;  %v77_v12 = vld [vmem:[#allocation5 + $0x58] sm:$0xff]  ;;  %v402_v13 = vpack.c.bf16 %v72_v10, %v70_v9  ;;  %v74_v15 = vld [vmem:[#allocation5 + $0x40] sm:$0xff]  ;;  %p575_p10 = scmp.ne.s32.totalorder %s345_s9, %s574_s10  ;;  %p580_p12 = scmp.lt.s32.totalorder %s574_s10, %s574_s10 }
  0x3b   :  { %399 = vmatpush1.bf16.msra.mxu0 %v398_v7  ;;  %v404_v14 = vpack.c.bf16 %v77_v12, %v75_v11  ;;  %v76_v16 = vld [vmem:[#allocation5 + $0x50] sm:$0xff]  ;;  %v79_v17 = vld [vmem:[#allocation5 + $0x68] sm:$0xff]  ;;  %v81_v18 = vld [vmem:[#allocation5 + $0x78] sm:$0xff] }
  0x3c   :  { %401 = vmatprep.subr.bf16.mxu0 %v400_v8  ;;  %v406_v19 = vpack.c.bf16 %v76_v16, %v74_v15  ;;  %v408_v20 = vpack.c.bf16 %v81_v18, %v79_v17  ;;  %v78_v21 = vld [vmem:[#allocation5 + $0x60] sm:$0xff]  ;;  %v80_v22 = vld [vmem:[#allocation5 + $0x70] sm:$0xff]  ;;  %v83_v23 = vld [vmem:[#allocation5 + $0x88] sm:$0xff]  ;;  %p581_p13 = por %p580_p12, %p579_p11 }
  0x3d   :  { %v85_v24 = vld [vmem:[#allocation5 + $0x98] sm:$0xff]  ;;  %v410_v25 = vpack.c.bf16 %v80_v22, %v78_v21  ;;  %v82_v27 = vld [vmem:[#allocation5 + $0x80] sm:$0xff]  ;;  %v84_v28 = vld [vmem:[#allocation5 + $0x90] sm:$0xff] }
  0x3e   :  { %v412_v26 = vpack.c.bf16 %v85_v24, %v83_v23  ;;  %v87_v29 = vld [vmem:[#allocation5 + $0xa8] sm:$0xff]  ;;  %v89_v30 = vld [vmem:[#allocation5 + $0xb8] sm:$0xff]  ;;  %v414_v31 = vpack.c.bf16 %v84_v28, %v82_v27  ;;  %v86_v33 = vld [vmem:[#allocation5 + $0xa0] sm:$0xff]  ;;  %p582_p0 = pnand %p581_p13, %p575_p10 }
  0x3f   :  { %403 = vmatpush1.bf16.msra.mxu0 %v402_v13  ;;  %v416_v32 = vpack.c.bf16 %v89_v30, %v87_v29  ;;  %v88_v34 = vld [vmem:[#allocation5 + $0xb0] sm:$0xff]  ;;  %v91_v35 = vld [vmem:[#allocation5 + $0xc8] sm:$0xff]  ;;  %v93_v36 = vld [vmem:[#allocation5 + $0xd8] sm:$0xff] }
  0x40   :  { %405 = vmatprep.subr.bf16.mxu0 %v404_v14  ;;  %v418_v37 = vpack.c.bf16 %v88_v34, %v86_v33  ;;  %v420_v38 = vpack.c.bf16 %v93_v36, %v91_v35  ;;  %v90_v39 = vld [vmem:[#allocation5 + $0xc0] sm:$0xff]  ;;  %v92_v40 = vld [vmem:[#allocation5 + $0xd0] sm:$0xff]  ;;  %v63_v41 = vld [vmem:[#allocation2 + $0x8] sm:$0xff] }
  0x41   :  { %v95_v42 = vld [vmem:[#allocation5 + $0xe8] sm:$0xff]  ;;  %v97_v43 = vld [vmem:[#allocation5 + $0xf8] sm:$0xff]  ;;  %206 = vmatprep.mubr.f32.mxu0 %v63_v41  ;;  %v239_v44 = vld [vmem:[#allocation7 + $0x80] sm:$0xff]  ;;  %v422_v50 = vpack.c.bf16 %v92_v40, %v90_v39 }
  0x42   :  { %v94_v45 = vld [vmem:[#allocation5 + $0xe0] sm:$0xff]  ;;  %v96_v46 = vld [vmem:[#allocation5 + $0xf0] sm:$0xff]  ;;  %v240_v47 = vld [vmem:[#allocation7 + $0x88] sm:$0xff]  ;;  %v424_v56 = vpack.c.bf16 %v97_v43, %v95_v42 }
  0x43   :  { %407 = vmatpush1.bf16.msra.mxu0 %v406_v19  ;;  %v223_v48 = vld [vmem:[#allocation7] sm:$0xff]  ;;  %v224_v49 = vld [vmem:[#allocation7 + $0x8] sm:$0xff]  ;;  %v460_v51 = vpack.c.bf16 %v240_v47, %v239_v44  ;;  %v241_v53 = vld [vmem:[#allocation7 + $0x90] sm:$0xff]  ;;  %v426_v0 = vpack.c.bf16 %v96_v46, %v94_v45 }
  0x44   :  { %409 = vmatprep.subr.bf16.mxu0 %v408_v20  ;;  %v462_v52 = vpack.c.bf16 %v224_v49, %v223_v48  ;;  %v242_v54 = vld [vmem:[#allocation7 + $0x98] sm:$0xff]  ;;  %v225_v55 = vld [vmem:[#allocation7 + $0x10] sm:$0xff]  ;;  %v243_v59 = vld [vmem:[#allocation7 + $0xa0] sm:$0xff] }
  0x45   :  { %v464_v57 = vpack.c.bf16 %v242_v54, %v241_v53  ;;  %v226_v58 = vld [vmem:[#allocation7 + $0x18] sm:$0xff]  ;;  %v244_v60 = vld [vmem:[#allocation7 + $0xa8] sm:$0xff]  ;;  %461 = vmatprep.subr.bf16.mxu1 %v460_v51  ;;  %v98_v1 = vld [vmem:[#allocation5 + $0x100] sm:$0xff] }
  0x46   :  { %v99_v61 = vld [vmem:[#allocation5 + $0x108] sm:$0xff]  ;;  %v101_v62 = vld [vmem:[#allocation5 + $0x118] sm:$0xff]  ;;  %463 = vmatpush3.bf16.msra.mxu1 %v462_v52  ;;  %v466_v63 = vpack.c.bf16 %v226_v58, %v225_v55  ;;  %v468_v2 = vpack.c.bf16 %v244_v60, %v243_v59  ;;  %v227_v3 = vld [vmem:[#allocation7 + $0x20] sm:$0xff] }
  0x47   :  { %411 = vmatpush1.bf16.msra.mxu0 %v410_v25  ;;  %465 = vmatprep.subr.bf16.mxu1 %v464_v57  ;;  %v228_v4 = vld [vmem:[#allocation7 + $0x28] sm:$0xff]  ;;  %v428_v5 = vpack.c.bf16 %v101_v62, %v99_v61  ;;  %v100_v6 = vld [vmem:[#allocation5 + $0x110] sm:$0xff]  ;;  %v246_v8 = vld [vmem:[#allocation7 + $0xb8] sm:$0xff] }
  0x48   :  { %413 = vmatprep.subr.bf16.mxu0 %v412_v26  ;;  %v245_v7 = vld [vmem:[#allocation7 + $0xb0] sm:$0xff]  ;;  %v103_v9 = vld [vmem:[#allocation5 + $0x128] sm:$0xff]  ;;  %v105_v10 = vld [vmem:[#allocation5 + $0x138] sm:$0xff]  ;;  %v470_v11 = vpack.c.bf16 %v228_v4, %v227_v3  ;;  %v430_v12 = vpack.c.bf16 %v100_v6, %v98_v1 }
  0x49   :  { %v472_v13 = vpack.c.bf16 %v246_v8, %v245_v7  ;;  %v229_v14 = vld [vmem:[#allocation7 + $0x30] sm:$0xff]  ;;  %v230_v15 = vld [vmem:[#allocation7 + $0x38] sm:$0xff]  ;;  %v432_v16 = vpack.c.bf16 %v105_v10, %v103_v9  ;;  %v102_v17 = vld [vmem:[#allocation5 + $0x120] sm:$0xff] }
  0x4a   :  { %467 = vmatpush3.bf16.msra.mxu1 %v466_v63  ;;  %v104_v18 = vld [vmem:[#allocation5 + $0x130] sm:$0xff]  ;;  %v107_v19 = vld [vmem:[#allocation5 + $0x148] sm:$0xff]  ;;  %v109_v20 = vld [vmem:[#allocation5 + $0x158] sm:$0xff]  ;;  %v474_v21 = vpack.c.bf16 %v230_v15, %v229_v14 }
  0x4b   :  { %415 = vmatpush1.bf16.msra.mxu0 %v414_v31  ;;  %469 = vmatprep.subr.bf16.mxu1 %v468_v2  ;;  %v434_v22 = vpack.c.bf16 %v104_v18, %v102_v17  ;;  %v436_v23 = vpack.c.bf16 %v109_v20, %v107_v19  ;;  %v106_v24 = vld [vmem:[#allocation5 + $0x140] sm:$0xff]  ;;  %v108_v25 = vld [vmem:[#allocation5 + $0x150] sm:$0xff]  ;;  %v111_v26 = vld [vmem:[#allocation5 + $0x168] sm:$0xff]  ;;  %v132_v20 = vlaneseq }
  0x4c   :  { %417 = vmatprep.subr.bf16.mxu0 %v416_v32  ;;  %v113_v27 = vld [vmem:[#allocation5 + $0x178] sm:$0xff]  ;;  %v438_v28 = vpack.c.bf16 %v108_v25, %v106_v24  ;;  %v110_v30 = vld [vmem:[#allocation5 + $0x160] sm:$0xff]  ;;  %v112_v31 = vld [vmem:[#allocation5 + $0x170] sm:$0xff] }
  0x4d   :  { %v440_v29 = vpack.c.bf16 %v113_v27, %v111_v26  ;;  %v115_v32 = vld [vmem:[#allocation5 + $0x188] sm:$0xff]  ;;  %v117_v33 = vld [vmem:[#allocation5 + $0x198] sm:$0xff]  ;;  %v442_v34 = vpack.c.bf16 %v112_v31, %v110_v30  ;;  %v114_v36 = vld [vmem:[#allocation5 + $0x180] sm:$0xff] }
  0x4e   :  { %471 = vmatpush3.bf16.msra.mxu1 %v470_v11  ;;  %v444_v35 = vpack.c.bf16 %v117_v33, %v115_v32  ;;  %v121_v39 = vld [vmem:[#allocation5 + $0x1b8] sm:$0xff]  ;;  %v118_v42 = vld [vmem:[#allocation5 + $0x1a0] sm:$0xff]  ;;  %v120_v43 = vld [vmem:[#allocation5 + $0x1b0] sm:$0xff] }
  0x4f   :  { %419 = vmatpush1.bf16.msra.mxu0 %v418_v37  ;;  %473 = vmatprep.subr.bf16.mxu1 %v472_v13  ;;  %v116_v37 = vld [vmem:[#allocation5 + $0x190] sm:$0xff]  ;;  %v123_v44 = vld [vmem:[#allocation5 + $0x1c8] sm:$0xff]  ;;  %v125_v45 = vld [vmem:[#allocation5 + $0x1d8] sm:$0xff]  ;;  %v450_v46 = vpack.c.bf16 %v120_v43, %v118_v42 }
  0x50   :  { %421 = vmatprep.subr.bf16.mxu0 %v420_v38  ;;  %v119_v38 = vld [vmem:[#allocation5 + $0x1a8] sm:$0xff]  ;;  %v446_v40 = vpack.c.bf16 %v116_v37, %v114_v36  ;;  %v452_v47 = vpack.c.bf16 %v125_v45, %v123_v44  ;;  %v122_v48 = vld [vmem:[#allocation5 + $0x1c0] sm:$0xff]  ;;  %v124_v49 = vld [vmem:[#allocation5 + $0x1d0] sm:$0xff] }
  0x51   :  { %v448_v41 = vpack.c.bf16 %v121_v39, %v119_v38  ;;  %v129_v51 = vld [vmem:[#allocation5 + $0x1f8] sm:$0xff]  ;;  %v454_v52 = vpack.c.bf16 %v124_v49, %v122_v48  ;;  %v126_v54 = vld [vmem:[#allocation5 + $0x1e0] sm:$0xff]  ;;  %v128_v55 = vld [vmem:[#allocation5 + $0x1f0] sm:$0xff] }
  0x52   :  { %475 = vmatpush3.bf16.msra.mxu1 %v474_v21  ;;  %v62_v57 = vld [vmem:[#allocation2] sm:$0xff]  ;;  %v65_v58 = vld [vmem:[#allocation2 + $0x18] sm:$0xff]  ;;  %v64_v59 = vld [vmem:[#allocation2 + $0x10] sm:$0xff]  ;;  %v133_v21 = vshrl.u32 %v132_v20, 7 }
  0x53   :  { %423 = vmatpush1.bf16.msra.mxu0 %v422_v50  ;;  %v127_v50 = vld [vmem:[#allocation5 + $0x1e8] sm:$0xff]  ;;  %v247_v60 = vld [vmem:[#allocation7 + $0xc0] sm:$0xff]  ;;  %v249_v2 = vld [vmem:[#allocation7 + $0xd0] sm:$0xff] }
  0x54   :  { %425 = vmatprep.subr.bf16.mxu0 %v424_v56  ;;  %v456_v53 = vpack.c.bf16 %v129_v51, %v127_v50  ;;  %v458_v56 = vpack.c.bf16 %v128_v55, %v126_v54  ;;  %v248_v61 = vld [vmem:[#allocation7 + $0xc8] sm:$0xff]  ;;  %v231_v63 = vld [vmem:[#allocation7 + $0x40] sm:$0xff]  ;;  %v250_v3 = vld [vmem:[#allocation7 + $0xd8] sm:$0xff]  ;;  %v138_v24 = vsub.s32 1, %v133_v21 }
  0x55   :  { %v476_v62 = vpack.c.bf16 %v248_v61, %v247_v60  ;;  %v480_v4 = vpack.c.bf16 %v250_v3, %v249_v2  ;;  %v234_v6 = vld [vmem:[#allocation7 + $0x58] sm:$0xff]  ;;  %v251_v8 = vld [vmem:[#allocation7 + $0xe0] sm:$0xff]  ;;  %v252_v9 = vld [vmem:[#allocation7 + $0xe8] sm:$0xff] }
  0x56   :  { %v484_v10 = vpack.c.bf16 %v252_v9, %v251_v8  ;;  %v235_v11 = vld [vmem:[#allocation7 + $0x60] sm:$0xff]  ;;  %v253_v14 = vld [vmem:[#allocation7 + $0xf0] sm:$0xff]  ;;  %v254_v15 = vld [vmem:[#allocation7 + $0xf8] sm:$0xff] }
  0x57   :  { %427 = vmatpush1.bf16.msra.mxu0 %v426_v0  ;;  %v232_v0 = vld [vmem:[#allocation7 + $0x48] sm:$0xff]  ;;  %477 = vmatprep.subr.bf16.mxu1 %v476_v62  ;;  %v488_v17 = vpack.c.bf16 %v254_v15, %v253_v14  ;;  %v238_v18 = vld [vmem:[#allocation7 + $0x78] sm:$0xff] }
  0x58   :  { %429 = vmatprep.subr.bf16.mxu0 %v428_v5  ;;  %v478_v1 = vpack.c.bf16 %v232_v0, %v231_v63  ;;  %v233_v5 = vld [vmem:[#allocation7 + $0x50] sm:$0xff] }
  0x59   :  { %v482_v7 = vpack.c.bf16 %v234_v6, %v233_v5 }
  0x5a   :  { %479 = vmatpush3.bf16.msra.mxu1 %v478_v1 }
  0x5b   :  { %431 = vmatpush1.bf16.msra.mxu0 %v430_v12  ;;  %481 = vmatprep.subr.bf16.mxu1 %v480_v4  ;;  %v236_v12 = vld [vmem:[#allocation7 + $0x68] sm:$0xff] }
  0x5c   :  { %433 = vmatprep.subr.bf16.mxu0 %v432_v16  ;;  %v486_v13 = vpack.c.bf16 %v236_v12, %v235_v11  ;;  %v237_v16 = vld [vmem:[#allocation7 + $0x70] sm:$0xff] }
  0x5d   :  { %v490_v19 = vpack.c.bf16 %v238_v18, %v237_v16 }
  0x5e   :  { %483 = vmatpush3.bf16.msra.mxu1 %v482_v7 }
  0x5f   :  { %435 = vmatpush1.bf16.msra.mxu0 %v434_v22  ;;  %485 = vmatprep.subr.bf16.mxu1 %v484_v10  ;;  %v134_v22 = vsub.s32 0, %v133_v21 }
  0x60   :  { %437 = vmatprep.subr.bf16.mxu0 %v436_v23  ;;  %v130_v23 = vld [vmem:[%s709_s2] sm:$0x3] }
  0x61   :  { %v135_v25 = vrot.slane %v130_v23, %v134_v22  ;;  %v139_v26 = vrot.slane %v130_v23, %v138_v24 }
  0x62   :  { %487 = vmatpush3.bf16.msra.mxu1 %v486_v13 }
  0x63   :  { %439 = vmatpush1.bf16.msra.mxu0 %v438_v28  ;;  %489 = vmatprep.subr.bf16.mxu1 %v488_v17 }
  0x64   :  { %441 = vmatprep.subr.bf16.mxu0 %v440_v29 }
  0x66   :  { %491 = vmatpush3.bf16.msra.mxu1 %v490_v19 }
  0x67   :  { %443 = vmatpush1.bf16.msra.mxu0 %v442_v34 }
  0x68   :  { %445 = vmatprep.subr.bf16.mxu0 %v444_v35 }
  0x6b   :  { %447 = vmatpush1.bf16.msra.mxu0 %v446_v40  ;;  %v357_v40 = vld [vmem:[%s711_s4] ss:$0 sm:$0xff] }
  0x6c   :  { %449 = vmatprep.subr.bf16.mxu0 %v448_v41 }
  0x6f   :  { %451 = vmatpush1.bf16.msra.mxu0 %v450_v46 }
  0x70   :  { %453 = vmatprep.subr.bf16.mxu0 %v452_v47 }
  0x73   :  { %455 = vmatpush1.bf16.msra.mxu0 %v454_v52 }
  0x74   :  { %457 = vmatprep.subr.bf16.mxu0 %v456_v53 }
  0x77   :  { %459 = vmatpush1.bf16.msra.mxu0 %v458_v56 }
  0x7a   :  { %207 = vmatmul.mubr.f32.vlgmr.msra.gmra.mrb[0].mxu0 %v62_v57 }
  0x7b   :  { %212 = vmatprep.mubr.f32.mxu0 %v65_v58 }
  0x7e   :  { %213 = vmatmul.mubr.f32.gmra.mrb[2].mxu0 %v64_v59 }
 0x14d   :  { %v208_v27 = vpop.f32.mrb[0].mxu0 }
 0x14e   :  { %v209_v28 = vadd.f32 %v208_v27, %v135_v25  ;;  %v210_v29 = vpop.f32.mrb[1].mxu0 }
 0x14f   :  { %v211_v30 = vadd.f32 %v210_v29, %v139_v26 }
 0x151   :  { %500 = vtanh.f32 %v211_v30  ;;  %v214_v31 = vpop.f32.mrb[2].mxu0 }
 0x152   :  { %502 = vtanh.f32 %v209_v28  ;;  %v215_v32 = vadd.f32 %v214_v31, %v135_v25  ;;  %v216_v33 = vpop.f32.mrb[3].mxu0 }
 0x153   :  { %v217_v34 = vadd.f32 %v216_v33, %v139_v26 }
 0x155   :  { %504 = vtanh.f32 %v217_v34 }
 0x156   :  { %506 = vtanh.f32 %v215_v32 }
 0x15b   :  { %v501_v35 = vpop.eup %500 }
 0x15c   :  { %v503_v36 = vpop.eup %502  ;;  %326 = vmatprep.mubr.f32.mxu1 %v501_v35 }
 0x15d   :  { %327 = vmatmul.mubr.f32.vlgmr.msra.gmra.mrb[0].mxu1 %v503_v36 }
 0x15f   :  { %v505_v37 = vpop.eup %504 }
 0x160   :  { %v507_v38 = vpop.eup %506  ;;  %331 = vmatprep.mubr.f32.mxu1 %v505_v37 }
 0x161   :  { %332 = vmatmul.mubr.f32.gmra.mrb[2].mxu1 %v507_v38 }
 0x230   :  { %v390_v39 = vpop.f32.mrb[0].mxu1 }
 0x231   :  { %v391_v41 = vpop.f32.mrb[1].mxu1 }
 0x232   :  { %v392_v42 = vadd.f32 %v391_v41, %v390_v39 }
 0x234   :  { %v329_v43 = vadd.f32 %v392_v42, %v357_v40  ;;  %v393_v44 = vpop.f32.mrb[2].mxu1 }
 0x235   :  { %v394_v45 = vpop.f32.mrb[3].mxu1 }
 0x236   :  { %337 = vst [vmem:[#allocation8] sm:$0xff] %v329_v43  ;;  %v395_v46 = vadd.f32 %v394_v45, %v393_v44 }
 0x238   :  { %v334_v47 = vadd.f32 %v395_v46, %v357_v40 }
 0x23a   :  { %338 = vst [vmem:[#allocation8 + $0x8] sm:$0xff] %v334_v47 }
 0x23b   :  { %585 = shalt.err (!%p582_p0)
}
 0x23c   :  { %s586_s12 = scalar_lea.hbm %s712_s5, 256 }
 0x23d   :  { %p587_p1 = scmp.ne.s32.totalorder %s712_s5, %s586_s12  ;;  %p590_p2 = scmp.lt.u32.totalorder %s586_s12, %s712_s5 }
 0x23f   :  { %p592_p3 = pnand %p590_p2, %p587_p1 }
 0x241   :  { %595 = shalt.err (!%p592_p3)
}
 0x242   :  { %350 = dma.vmem_to_hbm [thread:$0]  %s345_s9, 256, %s712_s5, [#allocation4], %s607_s0, %s607_s0, %s608_s21  }
 0x243   :  { %600 = dma.done.wait [#allocation4], 256  }
 0x244   :  { %601 = vsyncadd [#allocation4], 4294967040 }
 0x245   :  { %354 = vsyncpa [#allocation3], 1 }
 0x246   :  { %355 = vsyncpa [#allocation6], 1 }
 0x247   :  { %356 = vsyncpa [#allocation4], 1 }

</bundles_post_ra>
